<compile_context>
chip_gen: v7x
topology: tpu7x:2x2x1
jax: 0.10.0
libtpu: 0.0.40
codegen_flags: <defaults>
</compile_context>

<pallas_src>
import jax
import jax.numpy as jnp
from jax.experimental import pallas as pl
from jax.experimental.pallas import tpu as pltpu


def _round_up(n, m):
    return ((n + m - 1) // m) * m


def qnet_kernel(xa_ref, w1_ref, b1_ref, w2_ref, b2_ref, w3_ref, b3_ref, o_ref):
    # fc1: (TM, in1)bf16 @ (in1, W)bf16 -> f32 accumulate on the MXU.
    # Bias + ReLU in f32 on the VPU, then cast to bf16 in the same epilogue
    # so h1 is only materialized once (as bf16) in VMEM.
    h1 = jnp.maximum(
        jnp.dot(xa_ref[...], w1_ref[...], preferred_element_type=jnp.float32)
        + b1_ref[...],
        0.0,
    ).astype(jnp.bfloat16)

    # fc2: bf16 operands, f32 accumulate.
    h2 = jnp.maximum(
        jnp.dot(h1, w2_ref[...], preferred_element_type=jnp.float32) + b2_ref[...],
        0.0,
    )

    # fc3 (output width 1): VPU multiply + XLU row-reduce instead of an N=1
    # MXU matmul. Emit the result as a lane-dense (1, TM) row.
    q = jnp.sum(h2 * w3_ref[...], axis=-1)[None, :] + b3_ref[...]   # (1, TM)
    o_ref[...] = q.astype(o_ref.dtype)


def _choose_tiling(B, tm):
    """Pick (TM, num_tiles, Bp): TM a multiple of 16, minimal padding,
    and >= 2 tiles for mid/large batches so v7x's 2 TensorCores both work."""
    num_tiles = pl.cdiv(B, tm)
    if num_tiles == 1 and B > 16:
        num_tiles = 2                      # enable megacore sharding on v7x
    TM = _round_up(pl.cdiv(B, num_tiles), 16)
    num_tiles = pl.cdiv(B, TM)             # re-derive after rounding TM up
    Bp = num_tiles * TM
    return TM, num_tiles, Bp


def qnetwork_forward(x, a, params, *, tm=2048):
    """x: (B, obs_dim) f32, a: (B, act_dim) f32 -> (B, 1) f32."""
    w1, b1, w2, b2, w3_row, b3 = params
    B = x.shape[0]
    in1, width = w1.shape

    # Fold the concat into the wrapper; cast MXU operands to bf16 once.
    xa = jnp.concatenate([x, a], axis=1).astype(jnp.bfloat16)
    w1b = w1.astype(jnp.bfloat16)
    w2b = w2.astype(jnp.bfloat16)

    TM, num_tiles, Bp = _choose_tiling(B, tm)
    if Bp != B:
        xa = jnp.pad(xa, ((0, Bp - B), (0, 0)))

    row_spec = pl.BlockSpec((TM, in1), lambda i: (i, 0))          # activations
    out_spec = pl.BlockSpec((1, TM), lambda i: (i, 0))            # lane-dense q
    const_spec = lambda shape: pl.BlockSpec(shape, lambda i: (0, 0))

    cost = pl.CostEstimate(
        flops=int(2 * Bp * width * (in1 + width + 1)),
        transcendentals=0,
        bytes_accessed=int(2 * Bp * in1 + 4 * Bp
                           + 2 * width * (in1 + width) + 4 * (3 * width + 1)),
    )

    out = pl.pallas_call(
        qnet_kernel,
        out_shape=jax.ShapeDtypeStruct((num_tiles, TM), jnp.float32),
        grid=(num_tiles,),
        in_specs=[
            row_spec,                                   # per-tile activations
            const_spec(w1b.shape), const_spec(b1.shape),   # VMEM-resident
            const_spec(w2b.shape), const_spec(b2.shape),
            const_spec(w3_row.shape), const_spec(b3.shape),
        ],
        out_specs=out_spec,
        compiler_params=pltpu.CompilerParams(
            dimension_semantics=("parallel",),          # shard batch tiles on v7x
        ),
        cost_estimate=cost,
    )(xa, w1b, b1, w2b, b2, w3_row, b3)

    # (num_tiles, TM) rows are consecutive batch chunks -> flatten, drop pad.
    return out.reshape(-1)[:B].reshape(B, 1)


def init_params(key, obs_dim, act_dim, width):
    """Deterministic init mimicking nn.Linear (uniform +/- 1/sqrt(fan_in)).

    Weights are (in_features, out_features); biases (1, out_features).
    W3 is a (1, width) row so the kernel does a VPU multiply + row reduction
    instead of an N=1 matmul.
    """
    k1, k2, k3, k4, k5, k6 = jax.random.split(key, 6)
    in1 = obs_dim + act_dim
    s1 = 1.0 / jnp.sqrt(in1)
    s2 = 1.0 / jnp.sqrt(width)
    w1 = jax.random.uniform(k1, (in1, width), jnp.float32, -s1, s1)
    b1 = jax.random.uniform(k2, (1, width), jnp.float32, -s1, s1)
    w2 = jax.random.uniform(k3, (width, width), jnp.float32, -s2, s2)
    b2 = jax.random.uniform(k4, (1, width), jnp.float32, -s2, s2)
    w3_row = jax.random.uniform(k5, (1, width), jnp.float32, -s2, s2)
    b3 = jax.random.uniform(k6, (1, 1), jnp.float32, -s2, s2)
    return (w1, b1, w2, b2, w3_row, b3)


def reference_forward(x, a, params):
    """Pure-JAX f32 reference matching the PyTorch module."""
    w1, b1, w2, b2, w3_row, b3 = params
    xa = jnp.concatenate([x, a], axis=1)
    h = jax.nn.relu(xa @ w1 + b1)
    h = jax.nn.relu(h @ w2 + b2)
    return h @ w3_row.T + b3


def reference_forward_bf16(x, a, params):
    """Reference that emulates the kernel's numerics (bf16 operands,
    f32 accumulation) so we can assert with a tight tolerance."""
    w1, b1, w2, b2, w3_row, b3 = params
    xa = jnp.concatenate([x, a], axis=1).astype(jnp.bfloat16)
    h = jax.nn.relu(
        jnp.dot(xa, w1.astype(jnp.bfloat16), preferred_element_type=jnp.float32) + b1
    ).astype(jnp.bfloat16)
    h = jax.nn.relu(
        jnp.dot(h, w2.astype(jnp.bfloat16), preferred_element_type=jnp.float32) + b2
    )
    return jnp.sum(h * w3_row, axis=-1, keepdims=True) + b3


if __name__ == "__main__":
    B, OBS, ACT, WIDTH = 8, 16, 8, 256

    key = jax.random.PRNGKey(0)
    kx, ka, kp = jax.random.split(key, 3)
    x = jax.random.normal(kx, (B, OBS), jnp.float32)
    a = jax.random.normal(ka, (B, ACT), jnp.float32)
    params = init_params(kp, OBS, ACT, WIDTH)

    fwd = jax.jit(qnetwork_forward)   # fuses concat + bf16 cast + pad in XLA

    q = jax.block_until_ready(fwd(x, a, params))
    assert q.shape == (B, 1)
    # Tight check vs a bf16-emulated reference; loose check vs pure f32.
    assert jnp.allclose(q, reference_forward_bf16(x, a, params),
                        atol=2e-3, rtol=2e-3), "mismatch vs bf16 reference"
    assert jnp.allclose(q, reference_forward(x, a, params),
                        atol=5e-2, rtol=5e-2), "mismatch vs f32 reference"

    # Exercise the padded, multi-tile path (odd batch -> 2 tiles, TM=32).
    B2 = 37
    x2 = jax.random.normal(kx, (B2, OBS), jnp.float32)
    a2 = jax.random.normal(ka, (B2, ACT), jnp.float32)
    q2 = jax.block_until_ready(fwd(x2, a2, params))
    assert q2.shape == (B2, 1)
    assert jnp.allclose(q2, reference_forward_bf16(x2, a2, params),
                        atol=2e-3, rtol=2e-3), "multi-tile mismatch"

    print("KERNEL_OK")
</pallas_src>

<mosaic_0001>
module attributes {stable_mosaic.version = 11 : i64} {
  func.func @qnet_kernel(%arg0: i32, %arg1: memref<16x24xbf16, #tpu.memory_space<vmem>>, %arg2: memref<24x256xbf16, #tpu.memory_space<vmem>>, %arg3: memref<1x256xf32, #tpu.memory_space<vmem>>, %arg4: memref<256x256xbf16, #tpu.memory_space<vmem>>, %arg5: memref<1x256xf32, #tpu.memory_space<vmem>>, %arg6: memref<1x256xf32, #tpu.memory_space<vmem>>, %arg7: memref<1x1xf32, #tpu.memory_space<vmem>>, %arg8: memref<1x16xf32, #tpu.memory_space<vmem>>) attributes {dimension_semantics = [#tpu.dimension_semantics<parallel>], iteration_bounds = array<i64: 1>, scalar_prefetch = 0 : i64, scratch_operands = 0 : i64, tpu.core_type = #tpu.core_type<tc>, window_params = [{transform_indices = @transform_0, window_bounds = array<i64: 16, 24>}, {pipeline_mode = #tpu.pipeline_mode<synchronous>, transform_indices = @transform_1, window_bounds = array<i64: 24, 256>}, {pipeline_mode = #tpu.pipeline_mode<synchronous>, transform_indices = @transform_2, window_bounds = array<i64: 1, 256>}, {pipeline_mode = #tpu.pipeline_mode<synchronous>, transform_indices = @transform_3, window_bounds = array<i64: 256, 256>}, {pipeline_mode = #tpu.pipeline_mode<synchronous>, transform_indices = @transform_4, window_bounds = array<i64: 1, 256>}, {pipeline_mode = #tpu.pipeline_mode<synchronous>, transform_indices = @transform_5, window_bounds = array<i64: 1, 256>}, {pipeline_mode = #tpu.pipeline_mode<synchronous>, transform_indices = @transform_6, window_bounds = array<i64: 1, 1>}, {transform_indices = @transform_7, window_bounds = array<i64: 1, 16>}]} {
    %c0 = arith.constant 0 : index
    %c0_0 = arith.constant 0 : index
    %0 = vector.load %arg1[%c0, %c0_0] : memref<16x24xbf16, #tpu.memory_space<vmem>>, vector<16x24xbf16>
    %c0_1 = arith.constant 0 : index
    %c0_2 = arith.constant 0 : index
    %1 = vector.load %arg2[%c0_1, %c0_2] : memref<24x256xbf16, #tpu.memory_space<vmem>>, vector<24x256xbf16>
    %cst = arith.constant dense<0.000000e+00> : vector<16x256xf32>
    %2 = tpu.matmul %0, %1, %cst {dimension_numbers = #tpu.dot_dimension_numbers<[1], [0], [0], [1], [0, 0, 1, 1], [], []>} : vector<16x24xbf16>, vector<24x256xbf16>, vector<16x256xf32> -> vector<16x256xf32>
    %c0_3 = arith.constant 0 : index
    %c0_4 = arith.constant 0 : index
    %3 = vector.load %arg3[%c0_3, %c0_4] : memref<1x256xf32, #tpu.memory_space<vmem>>, vector<1x256xf32>
    %4 = vector.broadcast %3 : vector<1x256xf32> to vector<16x256xf32>
    %5 = arith.addf %2, %4 : vector<16x256xf32>
    %cst_5 = arith.constant 0.000000e+00 : f32
    %6 = vector.broadcast %cst_5 : f32 to vector<16x256xf32>
    %7 = arith.maximumf %5, %6 : vector<16x256xf32>
    %8 = arith.truncf %7 : vector<16x256xf32> to vector<16x256xbf16>
    %c0_6 = arith.constant 0 : index
    %c0_7 = arith.constant 0 : index
    %9 = vector.load %arg4[%c0_6, %c0_7] : memref<256x256xbf16, #tpu.memory_space<vmem>>, vector<256x256xbf16>
    %cst_8 = arith.constant dense<0.000000e+00> : vector<16x256xf32>
    %10 = tpu.matmul %8, %9, %cst_8 {dimension_numbers = #tpu.dot_dimension_numbers<[1], [0], [0], [1], [0, 0, 1, 1], [], []>} : vector<16x256xbf16>, vector<256x256xbf16>, vector<16x256xf32> -> vector<16x256xf32>
    %c0_9 = arith.constant 0 : index
    %c0_10 = arith.constant 0 : index
    %11 = vector.load %arg5[%c0_9, %c0_10] : memref<1x256xf32, #tpu.memory_space<vmem>>, vector<1x256xf32>
    %12 = vector.broadcast %11 : vector<1x256xf32> to vector<16x256xf32>
    %13 = arith.addf %10, %12 : vector<16x256xf32>
    %cst_11 = arith.constant 0.000000e+00 : f32
    %14 = vector.broadcast %cst_11 : f32 to vector<16x256xf32>
    %15 = arith.maximumf %13, %14 : vector<16x256xf32>
    %c0_12 = arith.constant 0 : index
    %c0_13 = arith.constant 0 : index
    %16 = vector.load %arg6[%c0_12, %c0_13] : memref<1x256xf32, #tpu.memory_space<vmem>>, vector<1x256xf32>
    %17 = vector.broadcast %16 : vector<1x256xf32> to vector<16x256xf32>
    %18 = arith.mulf %15, %17 : vector<16x256xf32>
    %cst_14 = arith.constant dense<0.000000e+00> : vector<16xf32>
    %19 = vector.multi_reduction <add>, %18, %cst_14 [1] : vector<16x256xf32> to vector<16xf32>
    %20 = vector.shape_cast %19 : vector<16xf32> to vector<1x16xf32>
    %c0_15 = arith.constant 0 : index
    %c0_16 = arith.constant 0 : index
    %21 = vector.load %arg7[%c0_15, %c0_16] : memref<1x1xf32, #tpu.memory_space<vmem>>, vector<1x1xf32>
    %22 = vector.broadcast %21 : vector<1x1xf32> to vector<1x16xf32>
    %23 = arith.addf %20, %22 : vector<1x16xf32>
    %c0_17 = arith.constant 0 : index
    %c0_18 = arith.constant 0 : index
    %24 = vector.load %arg8[%c0_17, %c0_18] : memref<1x16xf32, #tpu.memory_space<vmem>>, vector<1x16xf32>
    tpu.vector_store %arg8[%c0_17, %c0_18], %23 {strides = array<i32>} : memref<1x16xf32, #tpu.memory_space<vmem>>, vector<1x16xf32>,
    return
  }
  func.func @transform_0(%arg0: i32) -> (i32, i32) {
    %c0_i32 = arith.constant 0 : i32
    %c0_i32_0 = arith.constant 0 : i32
    return %arg0, %c0_i32 : i32, i32
  }
  func.func @transform_1(%arg0: i32) -> (i32, i32) {
    %c0_i32 = arith.constant 0 : i32
    %c0_i32_0 = arith.constant 0 : i32
    %c0_i32_1 = arith.constant 0 : i32
    return %c0_i32, %c0_i32_0 : i32, i32
  }
  func.func @transform_2(%arg0: i32) -> (i32, i32) {
    %c0_i32 = arith.constant 0 : i32
    %c0_i32_0 = arith.constant 0 : i32
    %c0_i32_1 = arith.constant 0 : i32
    return %c0_i32, %c0_i32_0 : i32, i32
  }
  func.func @transform_3(%arg0: i32) -> (i32, i32) {
    %c0_i32 = arith.constant 0 : i32
    %c0_i32_0 = arith.constant 0 : i32
    %c0_i32_1 = arith.constant 0 : i32
    return %c0_i32, %c0_i32_0 : i32, i32
  }
  func.func @transform_4(%arg0: i32) -> (i32, i32) {
    %c0_i32 = arith.constant 0 : i32
    %c0_i32_0 = arith.constant 0 : i32
    %c0_i32_1 = arith.constant 0 : i32
    return %c0_i32, %c0_i32_0 : i32, i32
  }
  func.func @transform_5(%arg0: i32) -> (i32, i32) {
    %c0_i32 = arith.constant 0 : i32
    %c0_i32_0 = arith.constant 0 : i32
    %c0_i32_1 = arith.constant 0 : i32
    return %c0_i32, %c0_i32_0 : i32, i32
  }
  func.func @transform_6(%arg0: i32) -> (i32, i32) {
    %c0_i32 = arith.constant 0 : i32
    %c0_i32_0 = arith.constant 0 : i32
    %c0_i32_1 = arith.constant 0 : i32
    return %c0_i32, %c0_i32_0 : i32, i32
  }
  func.func @transform_7(%arg0: i32) -> (i32, i32) {
    %c0_i32 = arith.constant 0 : i32
    %c0_i32_0 = arith.constant 0 : i32
    return %arg0, %c0_i32 : i32, i32
  }
}

</mosaic_0001>

<bundles_post_ra>
// kernel: qnetwork_forward.1
= control target key start
LH: loop header
LB: loop body
LE: loop exit
PB: predicated region body
PF: predicated region fallthrough
CT: control target
= control target key end

     0   :  { %v529_v1 = vmov 0   ;;  %vm70_vm0 = vcmask 1043456   ;;  %vm66_vm1 = vcmask 195584   ;;  %v36_v40 = vlaneseq  ;;  %s699_s1 = inlined_call_operand.vmem [shape: bf16[24,256], index: 1, kind: input, shape index: {}]   ;;  %s700_s0 = inlined_call_operand.vmem [shape: bf16[16,24], index: 0, kind: input, shape index: {}]   ;;  %s701_s3 = inlined_call_operand.vmem [shape: bf16[256,256], index: 3, kind: input, shape index: {}]   ;;  %s702_s2 = inlined_call_operand.vmem [shape: f32[1,256], index: 2, kind: input, shape index: {}]   ;;  %s703_s6 = inlined_call_operand.<no memory space> [shape: f32[1,1], index: 6, kind: input, shape index: {}]   ;;  %s704_s4 = inlined_call_operand.vmem [shape: f32[1,256], index: 4, kind: input, shape index: {}]   ;;  %s705_s5 = inlined_call_operand.vmem [shape: f32[1,256], index: 5, kind: input, shape index: {}]   ;;  %s706_s7 = inlined_call_operand.vmem [shape: f32[1,16], index: 7, kind: output, shape index: {}]  }
   0x1   :  { %v33_v0 = vld [vmem:[%s699_s1 + $0x10] sm:$0xff]  ;;  %109 = vmatprep.mubr.bf16.mxu0 %v529_v1  ;;  %473 = vset.pattern.permute.xlu1 %v529_v1  ;;  %v475_v2 = vld [vmem:[%s699_s1 + $0x4] ss:$8 sps:$4 sm:$0xff]   ;;  %v478_v4 = vld [vmem:[%s699_s1] ss:$8 sps:$4 sm:$0xff]   ;;  %v12_v61 = vstv %s703_s6  ;;  %vm424_vm2 = vcmask 130112  }
   0x2   :  { %v437_v3 = vcombine.high %v33_v0, %v33_v0  ;;  %v436_v5 = vcombine.low %v33_v0, %v33_v0  ;;  %474 = vset.pattern.permute.xlu0 %v529_v1  ;;  %77 = vmatprep.subr.bf16.mxu0 %v475_v2  ;;  %v481_v6 = vld [vmem:[%s701_s3 + $0x4] ss:$8 sps:$4 sm:$0xff]   ;;  %v483_v7 = vld [vmem:[%s701_s3] ss:$8 sps:$4 sm:$0xff]   ;;  %v484_v8 = vld [vmem:[%s701_s3 + $0x14] ss:$8 sps:$4 sm:$0xff]  }
   0x3   :  { %78 = vmatpush1.bf16.msra.mxu0 %v478_v4  ;;  %330 = vmatprep.subr.bf16.mxu1 %v481_v6  ;;  %v486_v10 = vld [vmem:[%s701_s3 + $0x10] ss:$8 sps:$4 sm:$0xff]   ;;  %v480_v11 = vld [vmem:[%s700_s0] sm:$0xff]   ;;  %v490_v14 = vld [vmem:[%s701_s3 + $0x34] ss:$8 sps:$4 sm:$0xff]   ;;  %v678_v41 = vshrl.u32 %v36_v40, 7 }
   0x4   :  { %438 = vmatprep.subr.msk.bf16.mxu0 %vm70_vm0, %v437_v3  ;;  %v72_v9 = vsel %vm70_vm0, %v436_v5, 0  ;;  %331 = vmatpush1.bf16.msra.mxu1 %v483_v7  ;;  %v487_v12 = vld [vmem:[%s701_s3 + $0x24] ss:$8 sps:$4 sm:$0xff]   ;;  %v489_v13 = vld [vmem:[%s701_s3 + $0x20] ss:$8 sps:$4 sm:$0xff]   ;;  %vm427_vm3 = vcmask 122880  }
   0x5   :  { %332 = vmatprep.subr.bf16.mxu1 %v484_v8  ;;  %v492_v15 = vld [vmem:[%s701_s3 + $0x30] ss:$8 sps:$4 sm:$0xff]   ;;  %v493_v16 = vld [vmem:[%s701_s3 + $0x44] ss:$8 sps:$4 sm:$0xff]   ;;  %v495_v17 = vld [vmem:[%s701_s3 + $0x40] ss:$8 sps:$4 sm:$0xff]  }
   0x6   :  { %v496_v18 = vld [vmem:[%s701_s3 + $0x54] ss:$8 sps:$4 sm:$0xff]   ;;  %v498_v19 = vld [vmem:[%s701_s3 + $0x50] ss:$8 sps:$4 sm:$0xff]   ;;  %v499_v20 = vld [vmem:[%s701_s3 + $0x64] ss:$8 sps:$4 sm:$0xff]  }
   0x7   :  { %80 = vmatpush1.bf16.msra.mxu0 %v72_v9  ;;  %v501_v21 = vld [vmem:[%s701_s3 + $0x60] ss:$8 sps:$4 sm:$0xff]   ;;  %v502_v22 = vld [vmem:[%s701_s3 + $0x74] ss:$8 sps:$4 sm:$0xff]   ;;  %v504_v23 = vld [vmem:[%s701_s3 + $0x70] ss:$8 sps:$4 sm:$0xff]  }
   0x8   :  { %333 = vmatpush1.bf16.msra.mxu1 %v486_v10  ;;  %v505_v24 = vld [vmem:[%s701_s3 + $0x84] ss:$8 sps:$4 sm:$0xff]   ;;  %v507_v25 = vld [vmem:[%s701_s3 + $0x80] ss:$8 sps:$4 sm:$0xff]   ;;  %v508_v26 = vld [vmem:[%s701_s3 + $0x94] ss:$8 sps:$4 sm:$0xff]  }
   0x9   :  { %334 = vmatprep.subr.bf16.mxu1 %v487_v12  ;;  %v510_v27 = vld [vmem:[%s701_s3 + $0x90] ss:$8 sps:$4 sm:$0xff]   ;;  %v511_v28 = vld [vmem:[%s701_s3 + $0xa4] ss:$8 sps:$4 sm:$0xff]   ;;  %v513_v29 = vld [vmem:[%s701_s3 + $0xa0] ss:$8 sps:$4 sm:$0xff]  }
   0xa   :  { %439 = vmatmul.mubr.msk.bf16.vlgmr.msra.gmra.mrb[0].mxu0 %vm66_vm1, %v480_v11  ;;  %v514_v30 = vld [vmem:[%s701_s3 + $0xb4] ss:$8 sps:$4 sm:$0xff]   ;;  %v516_v31 = vld [vmem:[%s701_s3 + $0xb0] ss:$8 sps:$4 sm:$0xff]   ;;  %v517_v32 = vld [vmem:[%s701_s3 + $0xc4] ss:$8 sps:$4 sm:$0xff]  }
   0xb   :  { %v519_v33 = vld [vmem:[%s701_s3 + $0xc0] ss:$8 sps:$4 sm:$0xff]   ;;  %v520_v34 = vld [vmem:[%s701_s3 + $0xd4] ss:$8 sps:$4 sm:$0xff]   ;;  %v522_v35 = vld [vmem:[%s701_s3 + $0xd0] ss:$8 sps:$4 sm:$0xff]  }
   0xc   :  { %335 = vmatpush1.bf16.msra.mxu1 %v489_v13  ;;  %v523_v36 = vld [vmem:[%s701_s3 + $0xe4] ss:$8 sps:$4 sm:$0xff]   ;;  %v525_v37 = vld [vmem:[%s701_s3 + $0xe0] ss:$8 sps:$4 sm:$0xff]   ;;  %v526_v38 = vld [vmem:[%s701_s3 + $0xf4] ss:$8 sps:$4 sm:$0xff]  }
   0xd   :  { %336 = vmatprep.subr.bf16.mxu1 %v490_v14  ;;  %v528_v39 = vld [vmem:[%s701_s3 + $0xf0] ss:$8 sps:$4 sm:$0xff]   ;;  %v38_v42 = vsub.s32 0, %v678_v41  ;;  %v34_v43 = vld [vmem:[%s702_s2] sm:$0x3]  ;;  %v42_v44 = vsub.s32 1, %v678_v41 }
   0xe   :  { %13 = vst [vmem:[#allocation2] sm:$0x1] %v12_v61  ;;  %v158_v63 = vld [vmem:[%s704_s4] sm:$0x3] }
   0xf   :  { %v39_v45 = vrot.slane %v34_v43, %v38_v42  ;;  %v43_v46 = vrot.slane %v34_v43, %v42_v44  ;;  %v163_v0 = vrot.slane %v158_v63, %v38_v42  ;;  %v167_v1 = vrot.slane %v158_v63, %v42_v44  ;;  %v377_v2 = vld [vmem:[%s705_s5] sm:$0x3] }
  0x10   :  { %337 = vmatpush1.bf16.msra.mxu1 %v492_v15  ;;  %v382_v6 = vrot.slane %v377_v2, %v38_v42  ;;  %v386_v9 = vrot.slane %v377_v2, %v42_v44 }
  0x11   :  { %338 = vmatprep.subr.bf16.mxu1 %v493_v16 }
  0x14   :  { %339 = vmatpush1.bf16.msra.mxu1 %v495_v17 }
  0x15   :  { %340 = vmatprep.subr.bf16.mxu1 %v496_v18  ;;  %v399_v62 = vld [vmem:[#allocation2] sm:$0x1] }
  0x16   :  { %402 = vperm.xlu1 %473, %v399_v62  }
  0x18   :  { %341 = vmatpush1.bf16.msra.mxu1 %v498_v19 }
  0x19   :  { %342 = vmatprep.subr.bf16.mxu1 %v499_v20 }
  0x1c   :  { %343 = vmatpush1.bf16.msra.mxu1 %v501_v21 }
  0x1d   :  { %344 = vmatprep.subr.bf16.mxu1 %v502_v22 }
  0x20   :  { %345 = vmatpush1.bf16.msra.mxu1 %v504_v23 }
  0x21   :  { %346 = vmatprep.subr.bf16.mxu1 %v505_v24  ;;  %v414_v24 = vand.u32 127, %v36_v40 }
  0x24   :  { %347 = vmatpush1.bf16.msra.mxu1 %v507_v25 }
  0x25   :  { %348 = vmatprep.subr.bf16.mxu1 %v508_v26  ;;  %v419_v26 = vadd.s32 4294967288, %v414_v24 }
  0x28   :  { %349 = vmatpush1.bf16.msra.mxu1 %v510_v27 }
  0x29   :  { %350 = vmatprep.subr.bf16.mxu1 %v511_v28  ;;  %v417_v28 = vsub.s32 %v414_v24, %v678_v41 }
  0x2c   :  { %351 = vmatpush1.bf16.msra.mxu1 %v513_v29 }
  0x2d   :  { %352 = vmatprep.subr.bf16.mxu1 %v514_v30  ;;  %v422_v30 = vsub.s32 %v419_v26, %v678_v41 }
  0x30   :  { %353 = vmatpush1.bf16.msra.mxu1 %v516_v31 }
  0x31   :  { %354 = vmatprep.subr.bf16.mxu1 %v517_v32 }
  0x34   :  { %355 = vmatpush1.bf16.msra.mxu1 %v519_v33 }
  0x35   :  { %356 = vmatprep.subr.bf16.mxu1 %v520_v34 }
  0x38   :  { %357 = vmatpush1.bf16.msra.mxu1 %v522_v35 }
  0x39   :  { %358 = vmatprep.subr.bf16.mxu1 %v523_v36 }
  0x3c   :  { %359 = vmatpush1.bf16.msra.mxu1 %v525_v37 }
  0x3d   :  { %360 = vmatprep.subr.bf16.mxu1 %v526_v38 }
  0x40   :  { %361 = vmatpush1.bf16.msra.mxu1 %v528_v39 }
  0x95   :  { %v403_v23 = vpop.permute.xlu1 %402 }
  0x96   :  { %v408_v25 = vrot.slane %v403_v23, %v38_v42 }
  0xdd   :  { %v111_v47 = vpop.f32.mrb[0].mxu0 }
  0xde   :  { %v112_v48 = vadd.f32 %v111_v47, %v39_v45  ;;  %v113_v49 = vpop.f32.mrb[1].mxu0 }
  0xdf   :  { %v114_v50 = vadd.f32 %v113_v49, %v43_v46  ;;  %v115_v51 = vpop.f32.mrb[2].mxu0 }
  0xe0   :  { %v116_v52 = vadd.f32 %v115_v51, %v39_v45  ;;  %v117_v53 = vpop.f32.mrb[3].mxu0  ;;  %v120_v55 = vmax.f32 %v112_v48, 0.0 }
  0xe1   :  { %v118_v54 = vadd.f32 %v117_v53, %v43_v46  ;;  %v121_v57 = vmax.f32 %v114_v50, 0.0 }
  0xe2   :  { %v122_v56 = vmax.f32 %v116_v52, 0.0 }
  0xe3   :  { %v123_v58 = vmax.f32 %v118_v54, 0.0 }
  0xe4   :  { %v124_v59 = vpack.c.bf16 %v122_v56, %v120_v55 }
  0xe5   :  { %v125_v60 = vpack.c.bf16 %v123_v58, %v121_v57 }
  0xe7   :  { %362 = vmatprep.mubr.bf16.mxu1 %v125_v60 }
  0xe8   :  { %363 = vmatmul.mubr.bf16.vlgmr.msra.gmra.mrb[0].mxu1 %v124_v59 }
 0x1bb   :  { %v364_v3 = vpop.f32.mrb[0].mxu1 }
 0x1bc   :  { %v365_v4 = vadd.f32 %v364_v3, %v163_v0  ;;  %v366_v5 = vpop.f32.mrb[1].mxu1 }
 0x1bd   :  { %v367_v7 = vadd.f32 %v366_v5, %v167_v1  ;;  %v368_v8 = vpop.f32.mrb[2].mxu1 }
 0x1be   :  { %v373_v10 = vmax.f32 %v365_v4, 0.0  ;;  %v369_v11 = vadd.f32 %v368_v8, %v163_v0  ;;  %v370_v12 = vpop.f32.mrb[3].mxu1 }
 0x1bf   :  { %v374_v13 = vmax.f32 %v367_v7, 0.0  ;;  %v371_v14 = vadd.f32 %v370_v12, %v167_v1 }
 0x1c0   :  { %v375_v15 = vmax.f32 %v369_v11, 0.0  ;;  %v389_v16 = vmul.f32 %v382_v6, %v373_v10 }
 0x1c1   :  { %v376_v17 = vmax.f32 %v371_v14, 0.0  ;;  %v390_v18 = vmul.f32 %v386_v9, %v374_v13 }
 0x1c2   :  { %v391_v19 = vmul.f32 %v382_v6, %v375_v15 }
 0x1c3   :  { %v392_v20 = vmul.f32 %v386_v9, %v376_v17  ;;  %v393_v21 = vadd.f32 %v390_v18, %v389_v16 }
 0x1c5   :  { %394 = vadd.xlane.f32.xlu0 %v393_v21  ;;  %v396_v22 = vadd.f32 %v392_v20, %v391_v19 }
 0x1c9   :  { %397 = vadd.xlane.f32.xlu0 %v396_v22 }
 0x252   :  { %v395_v27 = vpop.xlane.xlu0 %394 }
 0x253   :  { %v409_v29 = vadd.f32 %v408_v25, %v395_v27 }
 0x255   :  { %v418_v33 = vrot.slane %v409_v29, %v417_v28 }
 0x256   :  { %v398_v31 = vpop.xlane.xlu0 %397 }
 0x257   :  { %v410_v32 = vadd.f32 %v408_v25, %v398_v31 }
 0x259   :  { %v423_v34 = vrot.slane %v410_v32, %v422_v30 }
 0x25b   :  { %v425_v35 = vsel %vm424_vm2, %v423_v34, %v418_v33 }
 0x25c   :  { %428 = vst.msk [vmem:[%s706_s7] sm:$0x1] %vm427_vm3, %v425_v35 }

</bundles_post_ra>
